<compile_context>
chip_gen: v6e
topology: v6e:2x2x1
jax: 0.10.0
libtpu: 0.0.40
codegen_flags: <defaults>
</compile_context>

<pallas_src>
import functools

import jax
import jax.numpy as jnp
from jax.experimental import pallas as pl
from jax.experimental.pallas import tpu as pltpu


def attention_kernel(hb_ref, enc_ref, w1bd_ref, w2p_ref, out_ref, *, pack, dim):
    # hb_ref  : (TB, P*dim)     decoder projection, tiled P-wide along lanes
    # enc_ref : (TB, G, P*dim)  encoder block, P tokens packed per lane row
    # w1bd_ref: (P*dim, P*dim)  block-diagonal encoder weight (kron(I_P, W1e^T))
    # w2p_ref : (1, P*dim)      linear2 row, tiled P-wide along lanes
    TB, G, PD = enc_ref.shape
    e = enc_ref[...].astype(jnp.float32)                   # (TB, G, PD)

    # ---- packed encoder projection: one MXU matmul, P*dim-deep contraction ----
    # The (TB, G, PD) -> (TB*G, PD) reshape is a free relayout when G % 8 == 0
    # (f32 sublane pack).  When it is not (e.g. the tiny demo), Mosaic inserts a
    # block relayout copy, which is still a net win vs a dim-deep (4-8x
    # underfilled) MXU contraction.
    e2 = e.reshape(TB * G, PD)
    y = jnp.dot(e2, w1bd_ref[...], preferred_element_type=jnp.float32)
    x = jnp.tanh(y.reshape(TB, G, PD) + hb_ref[...][:, None, :])   # 128-lane dense

    # ---- per-token scores (VPU multiply + per-slot lane reduce) ----
    xw = x * w2p_ref[...]                                  # (TB, G, PD)
    scores = [jnp.sum(xw[:, :, k * dim:(k + 1) * dim], axis=-1, keepdims=True)
              for k in range(pack)]                        # each (TB, G, 1)

    # ---- softmax over all S = G*pack tokens of each batch row ----
    m = scores[0]
    for s in scores[1:]:
        m = jnp.maximum(m, s)
    m = jnp.max(m, axis=1, keepdims=True)                  # (TB, 1, 1)

    ps = [jnp.exp(s - m) for s in scores]                  # (TB, G, 1)
    p_tot = ps[0]
    for p in ps[1:]:
        p_tot = p_tot + p
    denom = jnp.sum(p_tot, axis=1)                         # (TB, 1)

    # ---- deferred normalization: un-normalized weighted sum, divide once ----
    acc = ps[0] * e[:, :, 0:dim]
    for k in range(1, pack):
        acc = acc + ps[k] * e[:, :, k * dim:(k + 1) * dim]
    attn = jnp.sum(acc, axis=1)                            # (TB, dim)

    # NOTE: pl.reciprocal(approx=True) would move the divide onto the idle EUP
    # slot; exact reciprocal kept so the 1e-5 check vs the f32 reference holds.
    out_ref[...] = (attn * pl.reciprocal(denom, approx=False)).astype(out_ref.dtype)


def _pick_pack(S, dim):
    """P tokens per 128-lane row: largest divisor of S with P*dim <= 128."""
    best = 1
    for p in range(1, S + 1):
        if S % p == 0 and p * dim <= 128:
            best = p
    return best


def _pick_block_b(B, S, dim, *, target_bytes=2 << 20, vmem_budget=24 << 20):
    """Batch rows per grid step.

    - divisor of B that is a multiple of 8 (f32 sublane) or exactly B
      (avoids sublane-rule violations / masked partial stores),
    - per-step encoder block sized toward ~2 MiB to amortize the ~0.35us
      grid-step overhead and keep the double-buffered DMA busy,
    - working set (~5 block-sized f32 buffers: double-buffered input + y/x/xw
      temporaries) capped at a v7x-safe ~24 MiB VMEM budget
      (v6e/v5e with 128 MiB VMEM can raise both budgets and use larger blocks),
    - prefer >= 4 grid steps (2 per TensorCore on v7x) when that still leaves
      a block within 4x of the byte target.
    """
    row_bytes = S * dim * 4
    divs = [d for d in range(1, B + 1) if B % d == 0 and (d % 8 == 0 or d == B)]
    fits = [d for d in divs if 5 * d * row_bytes <= vmem_budget] or [min(divs)]
    under = [d for d in fits if d * row_bytes <= target_bytes]
    tb = max(under) if under else min(fits)
    while B // tb < 4:
        smaller = [d for d in fits if d < tb and 4 * d * row_bytes >= target_bytes]
        if not smaller:
            break
        tb = max(smaller)
    return tb


def attention_forward(decoder_hidden, encoder_outputs, w1, b1, w2, b2=None,
                      *, block_b=None):
    """decoder_hidden: (B, dim), encoder_outputs: (B, S, dim).
    w1: (dim, 2*dim), b1: (dim,), w2: (1, dim), b2: (1,) (PyTorch layouts).
    b2 is accepted for API parity but unused: softmax is shift-invariant."""
    B, S, dim = encoder_outputs.shape
    f32 = jnp.float32

    # Decompose concat([h, e]) @ W1^T = h @ W1[:, :dim]^T + e @ W1[:, dim:]^T.
    # Decoder half (+ b1) hoisted out of the kernel as one batched XLA matmul.
    w1h_t = w1[:, :dim].T.astype(f32)                       # (dim, dim)
    w1e_t = w1[:, dim:].T.astype(f32)                       # (dim, dim)
    hb = decoder_hidden.astype(f32) @ w1h_t + b1.astype(f32)[None, :]   # (B, dim)

    # MXU / lane packing: P tokens per 128-lane row.
    P = _pick_pack(S, dim)
    G = S // P
    PD = P * dim
    enc_p = encoder_outputs.reshape(B, G, PD)               # contiguous: free reshape
    hb_p = jnp.tile(hb, (1, P))                             # (B, PD), tiny
    w1bd = jnp.kron(jnp.eye(P, dtype=f32), w1e_t)           # (PD, PD) block-diagonal
    w2_p = jnp.tile(w2.reshape(1, dim).astype(f32), (1, P)) # (1, PD)

    if (block_b is None or B % block_b != 0
            or not (block_b % 8 == 0 or block_b == B)):
        block_b = _pick_block_b(B, S, dim)
    grid = (B // block_b,)

    # Explicit VMEM budget (double-buffered inputs + f32 temporaries + weights),
    # clamped below v7x's 64 MiB physical VMEM.
    enc_blk = block_b * S * dim * 4
    vmem_est = (6 * enc_blk
                + 4 * block_b * PD * 4
                + 2 * PD * PD * 4 + 2 * PD * 4
                + 2 * block_b * dim * 4)
    vmem_limit = int(min(48 << 20, max(16 << 20, 2 * vmem_est)))

    kernel = functools.partial(attention_kernel, pack=P, dim=dim)
    out = pl.pallas_call(
        kernel,
        out_shape=jax.ShapeDtypeStruct((B, dim), encoder_outputs.dtype),
        grid_spec=pltpu.PrefetchScalarGridSpec(
            num_scalar_prefetch=0,
            grid=grid,
            in_specs=[
                pl.BlockSpec((block_b, PD), lambda b: (b, 0)),       # hb (tiled)
                pl.BlockSpec((block_b, G, PD), lambda b: (b, 0, 0)), # packed encoder
                pl.BlockSpec((PD, PD), lambda b: (0, 0)),            # block-diag W1e
                pl.BlockSpec((1, PD), lambda b: (0, 0)),             # tiled W2 row
            ],
            # dim < 128 output => masked lane stores; minor vs encoder read.
            out_specs=pl.BlockSpec((block_b, dim), lambda b: (b, 0)),
        ),
        compiler_params=pltpu.CompilerParams(
            dimension_semantics=("parallel",),
            vmem_limit_bytes=vmem_limit),
    )(hb_p, enc_p, w1bd, w2_p)
    return out


def attention_reference(decoder_hidden, encoder_outputs, w1, b1, w2, b2):
    B, S, dim = encoder_outputs.shape
    h_rep = jnp.broadcast_to(decoder_hidden[:, None, :], (B, S, dim))
    ctx = jnp.concatenate([h_rep, encoder_outputs], axis=2).reshape(-1, 2 * dim)
    hid = jnp.tanh(ctx @ w1.T + b1)
    scores = (hid @ w2.T + b2).reshape(B, S)
    alpha = jax.nn.softmax(scores, axis=1)
    return jnp.einsum("bs,bsd->bd", alpha, encoder_outputs)


if __name__ == "__main__":
    B, S, dim = 2, 8, 32
    key = jax.random.PRNGKey(0)
    k_dec, k_enc, k_w1, k_b1, k_w2, k_b2 = jax.random.split(key, 6)

    decoder_hidden = jax.random.normal(k_dec, (B, dim), dtype=jnp.float32)
    encoder_outputs = jax.random.normal(k_enc, (B, S, dim), dtype=jnp.float32)

    # Deterministic parameter init (xavier-normal weights, small biases).
    std1 = (2.0 / (2 * dim + dim)) ** 0.5
    std2 = (2.0 / (dim + 1)) ** 0.5
    w1 = std1 * jax.random.normal(k_w1, (dim, 2 * dim), dtype=jnp.float32)
    b1 = 0.01 * jax.random.normal(k_b1, (dim,), dtype=jnp.float32)
    w2 = std2 * jax.random.normal(k_w2, (1, dim), dtype=jnp.float32)
    b2 = 0.01 * jax.random.normal(k_b2, (1,), dtype=jnp.float32)

    out = attention_forward(decoder_hidden, encoder_outputs, w1, b1, w2, b2)
    out = jax.block_until_ready(out)

    ref = attention_reference(decoder_hidden, encoder_outputs, w1, b1, w2, b2)
    assert out.shape == (B, dim)
    assert jnp.allclose(out, ref, atol=1e-5, rtol=1e-5)
    print("KERNEL_OK")
</pallas_src>

<mosaic_0001>
module attributes {stable_mosaic.version = 11 : i64} {
  func.func @attention_kernel(%arg0: i32, %arg1: memref<2x128xf32, #tpu.memory_space<vmem>>, %arg2: memref<2x2x128xf32, #tpu.memory_space<vmem>>, %arg3: memref<128x128xf32, #tpu.memory_space<vmem>>, %arg4: memref<1x128xf32, #tpu.memory_space<vmem>>, %arg5: memref<2x32xf32, #tpu.memory_space<vmem>>) attributes {dimension_semantics = [#tpu.dimension_semantics<parallel>], iteration_bounds = array<i64: 1>, scalar_prefetch = 0 : i64, scratch_operands = 0 : i64, tpu.core_type = #tpu.core_type<tc>, window_params = [{transform_indices = @transform_0, window_bounds = array<i64: 2, 128>}, {transform_indices = @transform_1, window_bounds = array<i64: 2, 2, 128>}, {pipeline_mode = #tpu.pipeline_mode<synchronous>, transform_indices = @transform_2, window_bounds = array<i64: 128, 128>}, {pipeline_mode = #tpu.pipeline_mode<synchronous>, transform_indices = @transform_3, window_bounds = array<i64: 1, 128>}, {transform_indices = @transform_4, window_bounds = array<i64: 2, 32>}]} {
    %c0 = arith.constant 0 : index
    %c0_0 = arith.constant 0 : index
    %c0_1 = arith.constant 0 : index
    %0 = vector.load %arg2[%c0, %c0_0, %c0_1] : memref<2x2x128xf32, #tpu.memory_space<vmem>>, vector<2x2x128xf32>
    %1 = vector.shape_cast %0 : vector<2x2x128xf32> to vector<4x128xf32>
    %c0_2 = arith.constant 0 : index
    %c0_3 = arith.constant 0 : index
    %2 = vector.load %arg3[%c0_2, %c0_3] : memref<128x128xf32, #tpu.memory_space<vmem>>, vector<128x128xf32>
    %cst = arith.constant dense<0.000000e+00> : vector<4x128xf32>
    %3 = tpu.matmul %1, %2, %cst {dimension_numbers = #tpu.dot_dimension_numbers<[1], [0], [0], [1], [0, 0, 1, 1], [], []>} : vector<4x128xf32>, vector<128x128xf32>, vector<4x128xf32> -> vector<4x128xf32>
    %4 = vector.shape_cast %3 : vector<4x128xf32> to vector<2x2x128xf32>
    %c0_4 = arith.constant 0 : index
    %c0_5 = arith.constant 0 : index
    %5 = vector.load %arg1[%c0_4, %c0_5] : memref<2x128xf32, #tpu.memory_space<vmem>>, vector<2x128xf32>
    %6 = vector.shape_cast %5 : vector<2x128xf32> to vector<2x1x128xf32>
    %7 = vector.broadcast %6 : vector<2x1x128xf32> to vector<2x2x128xf32>
    %8 = arith.addf %4, %7 : vector<2x2x128xf32>
    %9 = math.tanh %8 : vector<2x2x128xf32>
    %c0_6 = arith.constant 0 : index
    %c0_7 = arith.constant 0 : index
    %10 = vector.load %arg4[%c0_6, %c0_7] : memref<1x128xf32, #tpu.memory_space<vmem>>, vector<1x128xf32>
    %11 = vector.shape_cast %10 : vector<1x128xf32> to vector<1x1x128xf32>
    %12 = vector.broadcast %11 : vector<1x1x128xf32> to vector<2x2x128xf32>
    %13 = arith.mulf %9, %12 : vector<2x2x128xf32>
    %14 = vector.extract_strided_slice %13 {offsets = [0, 0, 0], sizes = [2, 2, 32], strides = [1, 1, 1]} : vector<2x2x128xf32> to vector<2x2x32xf32>
    %cst_8 = arith.constant dense<0.000000e+00> : vector<2x2xf32>
    %15 = vector.multi_reduction <add>, %14, %cst_8 [2] : vector<2x2x32xf32> to vector<2x2xf32>
    %16 = vector.shape_cast %15 : vector<2x2xf32> to vector<2x2x1xf32>
    %17 = vector.extract_strided_slice %13 {offsets = [0, 0, 32], sizes = [2, 2, 32], strides = [1, 1, 1]} : vector<2x2x128xf32> to vector<2x2x32xf32>
    %cst_9 = arith.constant dense<0.000000e+00> : vector<2x2xf32>
    %18 = vector.multi_reduction <add>, %17, %cst_9 [2] : vector<2x2x32xf32> to vector<2x2xf32>
    %19 = vector.shape_cast %18 : vector<2x2xf32> to vector<2x2x1xf32>
    %20 = vector.extract_strided_slice %13 {offsets = [0, 0, 64], sizes = [2, 2, 32], strides = [1, 1, 1]} : vector<2x2x128xf32> to vector<2x2x32xf32>
    %cst_10 = arith.constant dense<0.000000e+00> : vector<2x2xf32>
    %21 = vector.multi_reduction <add>, %20, %cst_10 [2] : vector<2x2x32xf32> to vector<2x2xf32>
    %22 = vector.shape_cast %21 : vector<2x2xf32> to vector<2x2x1xf32>
    %23 = vector.extract_strided_slice %13 {offsets = [0, 0, 96], sizes = [2, 2, 32], strides = [1, 1, 1]} : vector<2x2x128xf32> to vector<2x2x32xf32>
    %cst_11 = arith.constant dense<0.000000e+00> : vector<2x2xf32>
    %24 = vector.multi_reduction <add>, %23, %cst_11 [2] : vector<2x2x32xf32> to vector<2x2xf32>
    %25 = vector.shape_cast %24 : vector<2x2xf32> to vector<2x2x1xf32>
    %26 = arith.maximumf %16, %19 : vector<2x2x1xf32>
    %27 = arith.maximumf %26, %22 : vector<2x2x1xf32>
    %28 = arith.maximumf %27, %25 : vector<2x2x1xf32>
    %cst_12 = arith.constant dense<0xFF800000> : vector<2x1xf32>
    %29 = vector.multi_reduction <maximumf>, %28, %cst_12 [1] : vector<2x2x1xf32> to vector<2x1xf32>
    %30 = vector.shape_cast %29 : vector<2x1xf32> to vector<2x1x1xf32>
    %31 = vector.broadcast %30 : vector<2x1x1xf32> to vector<2x2x1xf32>
    %32 = arith.subf %16, %31 : vector<2x2x1xf32>
    %33 = math.exp %32 : vector<2x2x1xf32>
    %34 = vector.broadcast %30 : vector<2x1x1xf32> to vector<2x2x1xf32>
    %35 = arith.subf %19, %34 : vector<2x2x1xf32>
    %36 = math.exp %35 : vector<2x2x1xf32>
    %37 = vector.broadcast %30 : vector<2x1x1xf32> to vector<2x2x1xf32>
    %38 = arith.subf %22, %37 : vector<2x2x1xf32>
    %39 = math.exp %38 : vector<2x2x1xf32>
    %40 = vector.broadcast %30 : vector<2x1x1xf32> to vector<2x2x1xf32>
    %41 = arith.subf %25, %40 : vector<2x2x1xf32>
    %42 = math.exp %41 : vector<2x2x1xf32>
    %43 = arith.addf %33, %36 : vector<2x2x1xf32>
    %44 = arith.addf %43, %39 : vector<2x2x1xf32>
    %45 = arith.addf %44, %42 : vector<2x2x1xf32>
    %cst_13 = arith.constant dense<0.000000e+00> : vector<2x1xf32>
    %46 = vector.multi_reduction <add>, %45, %cst_13 [1] : vector<2x2x1xf32> to vector<2x1xf32>
    %47 = vector.extract_strided_slice %0 {offsets = [0, 0, 0], sizes = [2, 2, 32], strides = [1, 1, 1]} : vector<2x2x128xf32> to vector<2x2x32xf32>
    %48 = vector.broadcast %33 : vector<2x2x1xf32> to vector<2x2x32xf32>
    %49 = arith.mulf %48, %47 : vector<2x2x32xf32>
    %50 = vector.extract_strided_slice %0 {offsets = [0, 0, 32], sizes = [2, 2, 32], strides = [1, 1, 1]} : vector<2x2x128xf32> to vector<2x2x32xf32>
    %51 = vector.broadcast %36 : vector<2x2x1xf32> to vector<2x2x32xf32>
    %52 = arith.mulf %51, %50 : vector<2x2x32xf32>
    %53 = arith.addf %49, %52 : vector<2x2x32xf32>
    %54 = vector.extract_strided_slice %0 {offsets = [0, 0, 64], sizes = [2, 2, 32], strides = [1, 1, 1]} : vector<2x2x128xf32> to vector<2x2x32xf32>
    %55 = vector.broadcast %39 : vector<2x2x1xf32> to vector<2x2x32xf32>
    %56 = arith.mulf %55, %54 : vector<2x2x32xf32>
    %57 = arith.addf %53, %56 : vector<2x2x32xf32>
    %58 = vector.extract_strided_slice %0 {offsets = [0, 0, 96], sizes = [2, 2, 32], strides = [1, 1, 1]} : vector<2x2x128xf32> to vector<2x2x32xf32>
    %59 = vector.broadcast %42 : vector<2x2x1xf32> to vector<2x2x32xf32>
    %60 = arith.mulf %59, %58 : vector<2x2x32xf32>
    %61 = arith.addf %57, %60 : vector<2x2x32xf32>
    %cst_14 = arith.constant dense<0.000000e+00> : vector<2x32xf32>
    %62 = vector.multi_reduction <add>, %61, %cst_14 [1] : vector<2x2x32xf32> to vector<2x32xf32>
    %63 = tpu.reciprocal %46 : vector<2x1xf32> -> vector<2x1xf32>
    %64 = vector.broadcast %63 : vector<2x1xf32> to vector<2x32xf32>
    %65 = arith.mulf %62, %64 : vector<2x32xf32>
    %c0_15 = arith.constant 0 : index
    %c0_16 = arith.constant 0 : index
    %66 = vector.load %arg5[%c0_15, %c0_16] : memref<2x32xf32, #tpu.memory_space<vmem>>, vector<2x32xf32>
    tpu.vector_store %arg5[%c0_15, %c0_16], %65 {strides = array<i32>} : memref<2x32xf32, #tpu.memory_space<vmem>>, vector<2x32xf32>,
    return
  }
  func.func @transform_0(%arg0: i32) -> (i32, i32) {
    %c0_i32 = arith.constant 0 : i32
    %c0_i32_0 = arith.constant 0 : i32
    return %arg0, %c0_i32 : i32, i32
  }
  func.func @transform_1(%arg0: i32) -> (i32, i32, i32) {
    %c0_i32 = arith.constant 0 : i32
    %c0_i32_0 = arith.constant 0 : i32
    %c0_i32_1 = arith.constant 0 : i32
    return %arg0, %c0_i32, %c0_i32_0 : i32, i32, i32
  }
  func.func @transform_2(%arg0: i32) -> (i32, i32) {
    %c0_i32 = arith.constant 0 : i32
    %c0_i32_0 = arith.constant 0 : i32
    %c0_i32_1 = arith.constant 0 : i32
    return %c0_i32, %c0_i32_0 : i32, i32
  }
  func.func @transform_3(%arg0: i32) -> (i32, i32) {
    %c0_i32 = arith.constant 0 : i32
    %c0_i32_0 = arith.constant 0 : i32
    %c0_i32_1 = arith.constant 0 : i32
    return %c0_i32, %c0_i32_0 : i32, i32
  }
  func.func @transform_4(%arg0: i32) -> (i32, i32) {
    %c0_i32 = arith.constant 0 : i32
    %c0_i32_0 = arith.constant 0 : i32
    return %arg0, %c0_i32 : i32, i32
  }
}

</mosaic_0001>

<bundles_post_ra>
// kernel: tpu_custom_call.1
= control target key start
LH: loop header
LB: loop body
LE: loop exit
PB: predicated region body
PF: predicated region fallthrough
CT: control target
= control target key end

     0   :  { %9 = vsyncpa [#allocation3], 0  ;;  %s691_s0 = inlined_call_operand.hbm [shape: f32[2,128], index: 0, kind: input, shape index: {}]   ;;  %s692_s1 = inlined_call_operand.hbm [shape: f32[2,2,128], index: 1, kind: input, shape index: {}]   ;;  %s693_s2 = inlined_call_operand.hbm [shape: f32[128,128], index: 2, kind: input, shape index: {}]   ;;  %s694_s3 = inlined_call_operand.vmem [shape: f32[1,128], index: 3, kind: input, shape index: {}]   ;;  %s695_s4 = inlined_call_operand.hbm [shape: f32[2,32], index: 4, kind: output, shape index: {}]  }
   0x1   :  { %10 = vsyncpa [#allocation6], 0 }
   0x2   :  { %11 = vsyncpa [#allocation4], 0  ;;  %s594_s15 = smov [#allocation5]  }
   0x3   :  { %s27_s16 = sshll.u32 %s594_s15, 4  ;;  %s28_s16 = int_to_ptr.vmem [resolvable:$true] %s27_s16 }
   0x4   :  { %s516_s17 = scalar_lea.vmem %s28_s16, 64  ;;  %p521_p1 = scmp.lt.s32.totalorder %s28_s16, %s28_s16 }
   0x5   :  { %p517_p0 = scmp.ne.s32.totalorder %s28_s16, %s516_s17  ;;  %p522_p2 = scmp.lt.s32.totalorder %s516_s17, %s516_s17 }
   0x7   :  { %p523_p3 = por %p522_p2, %p521_p1 }
   0x9   :  { %p524_p4 = pnand %p523_p3, %p517_p0 }
   0xb   :  { %527 = shalt.err (!%p524_p4)
}
   0xc   :  { %s595_s18 = smov 32   ;;  %s596_s19 = smov 2  }
   0xd   :  { %33 = dma.hbm_to_vmem [thread:$0]  %s692_s1, 64, %s28_s16, [#allocation6], %s595_s18, %s595_s18, %s596_s19  }
   0xe   :  { %s597_s22 = smov [#allocation2]   ;;  %s598_s24 = smov [#allocation7]  }
   0xf   :  { %s18_s23 = sshll.u32 %s597_s22, 4  ;;  %s39_s25 = sshll.u32 %s598_s24, 4  ;;  %s19_s23 = int_to_ptr.vmem [resolvable:$true] %s18_s23  ;;  %s40_s25 = int_to_ptr.vmem [resolvable:$true] %s39_s25 }
  0x10   :  { %s536_s26 = scalar_lea.vmem %s19_s23, 32  ;;  %p541_p6 = scmp.lt.s32.totalorder %s19_s23, %s19_s23 }
  0x11   :  { %p537_p5 = scmp.ne.s32.totalorder %s19_s23, %s536_s26  ;;  %p542_p7 = scmp.lt.s32.totalorder %s536_s26, %s536_s26 }
  0x13   :  { %p543_p8 = por %p542_p7, %p541_p6 }
  0x15   :  { %p544_p9 = pnand %p543_p8, %p537_p5 }
  0x17   :  { %547 = shalt.err (!%p544_p9)
}
  0x18   :  { %21 = dma.hbm_to_vmem [thread:$0]  %s691_s0, 32, %s19_s23, [#allocation3]  }
  0x19   :  { %s556_s29 = scalar_lea.vmem %s40_s25, 2048  ;;  %p561_p11 = scmp.lt.s32.totalorder %s40_s25, %s40_s25 }
  0x1a   :  { %p557_p10 = scmp.ne.s32.totalorder %s40_s25, %s556_s29  ;;  %p562_p12 = scmp.lt.s32.totalorder %s556_s29, %s556_s29 }
  0x1c   :  { %p563_p13 = por %p562_p12, %p561_p11 }
  0x1e   :  { %p564_p0 = pnand %p563_p13, %p557_p10 }
  0x20   :  { %567 = shalt.err (!%p564_p0)
}
  0x21   :  { %s599_s1 = smov 128   ;;  %s600_s30 = smov 8  }
  0x22   :  { %45 = dma.hbm_to_vmem [thread:$0]  %s693_s2, 2048, %s40_s25, [#allocation6], %s599_s1, %s599_s1, %s600_s30  }
  0x23   :  { %588 = dma.done.wait [#allocation3], 32  }
  0x24   :  { %589 = vsyncadd [#allocation3], 4294967264 }
  0x25   :  { %590 = dma.done.wait [#allocation6], 2112  }
  0x26   :  { %591 = vsyncadd [#allocation6], 4294965184  ;;  %v601_v0 = vmov 0.0   ;;  %vm602_vm0 = vmmov 0   ;;  %v74_v1 = vld [vmem:[#allocation7 + $0x78] sm:$0xff]  ;;  %v73_v2 = vld [vmem:[#allocation7 + $0x70] sm:$0xff]  ;;  %v81_v13 = vlaneseq }
  0x27   :  { %435 = vmatprep.subr.mxu0 %v601_v0  ;;  %467 = vmatprep.mubr.msk.f32.mxu0 %vm602_vm0, %v601_v0  ;;  %v72_v3 = vld [vmem:[#allocation7 + $0x68] sm:$0xff]  ;;  %v71_v4 = vld [vmem:[#allocation7 + $0x60] sm:$0xff]  ;;  %v70_v5 = vld [vmem:[#allocation7 + $0x58] sm:$0xff]  ;;  %v603_v11 = vmov 1983009808   ;;  %s605_s7 = smov 64  }
  0x28   :  { %436 = vmatpush3.msra.mxu0 %v74_v1  ;;  %v69_v6 = vld [vmem:[#allocation7 + $0x50] sm:$0xff]  ;;  %v68_v7 = vld [vmem:[#allocation7 + $0x48] sm:$0xff]  ;;  %v67_v8 = vld [vmem:[#allocation7 + $0x40] sm:$0xff]  ;;  %v79_v12 = vunpack.c.l.s4 %v603_v11  ;;  %v82_v17 = vshrl.u32 %v81_v13, 7  ;;  %v604_v27 = vmov 1966171168  }
  0x29   :  { %437 = vmatprep.subr.mxu0 %v601_v0  ;;  %v66_v9 = vld [vmem:[#allocation7 + $0x38] sm:$0xff]  ;;  %v65_v10 = vld [vmem:[#allocation7 + $0x30] sm:$0xff]  ;;  %v64_v14 = vld [vmem:[#allocation7 + $0x28] sm:$0xff]  ;;  %v178_v28 = vunpack.c.l.s4 %v604_v27  ;;  %s606_s8 = smov 96   ;;  %vm214_vm1 = vcmask 254976   ;;  %vm279_vm2 = vcmask 1041408  }
  0x2a   :  { %438 = vmatpush3.msra.mxu0 %v73_v2  ;;  %v63_v15 = vld [vmem:[#allocation7 + $0x20] sm:$0xff]  ;;  %v80_v16 = vunpack.c.0.s8 %v79_v12  ;;  %v644_v18 = vld [vmem:[#allocation5] sm:$0x3]  ;;  %v646_v19 = vld [vmem:[#allocation5 + $0x2] sm:$0x3]  ;;  %v193_v34 = vsub.s32 0, %v82_v17 }
  0x2b   :  { %439 = vmatprep.subr.mxu0 %v601_v0  ;;  %v62_v20 = vld [vmem:[#allocation7 + $0x18] sm:$0xff]  ;;  %v61_v21 = vld [vmem:[#allocation7 + $0x10] sm:$0xff]  ;;  %v77_v22 = vcombine.low %v644_v18, %v646_v19  ;;  %v60_v24 = vld [vmem:[#allocation7 + $0x8] sm:$0xff]  ;;  %v179_v29 = vunpack.c.0.s8 %v178_v28  ;;  %vm396_vm3 = vcmask 1041409  }
  0x2c   :  { %440 = vmatpush3.msra.mxu0 %v72_v3  ;;  %v83_v23 = vsub.s32 %v80_v16, %v82_v17  ;;  %v59_v25 = vld [vmem:[#allocation7] sm:$0xff]  ;;  %v416_v30 = vld.sshfl [vmem:[#allocation2] sm:$0x11 pattern:$0x75316420] }
  0x2d   :  { %441 = vmatprep.subr.mxu0 %v601_v0  ;;  %v182_v31 = vsub.s32 %v179_v29, %v82_v17  ;;  %v176_v32 = vcombine.high %v416_v30, %v416_v30  ;;  %v417_v44 = vld [vmem:[%s694_s3] ss:$0 sm:$0xff]  ;;  %s607_s3 = smov [#allocation8]  }
  0x2e   :  { %442 = vmatpush3.msra.mxu0 %v71_v4  ;;  %v84_v26 = vrot.slane %v77_v22, %v83_v23  ;;  %s406_s9 = sshll.u32 %s607_s3, 4  ;;  %s407_s9 = int_to_ptr.vmem [resolvable:$true] %s406_s9 }
  0x2f   :  { %443 = vmatprep.subr.mxu0 %v601_v0  ;;  %v183_v33 = vrot.slane %v416_v30, %v182_v31  ;;  %v190_v35 = vrot.slane %v176_v32, %v182_v31  ;;  %s568_s10 = scalar_lea.vmem %s407_s9, 32  ;;  %p573_p2 = scmp.lt.s32.totalorder %s407_s9, %s407_s9 }
  0x30   :  { %444 = vmatpush3.msra.mxu0 %v70_v5  ;;  %p569_p1 = scmp.ne.s32.totalorder %s407_s9, %s568_s10  ;;  %p574_p3 = scmp.lt.s32.totalorder %s568_s10, %s568_s10 }
  0x31   :  { %445 = vmatprep.subr.mxu0 %v601_v0  ;;  %v194_v36 = vrot.slane %v183_v33, %v193_v34  ;;  %v198_v39 = vrot.slane %v190_v35, %v193_v34 }
  0x32   :  { %446 = vmatpush3.msra.mxu0 %v69_v6  ;;  %p575_p4 = por %p574_p3, %p573_p2 }
  0x33   :  { %447 = vmatprep.subr.mxu0 %v601_v0 }
  0x34   :  { %448 = vmatpush3.msra.mxu0 %v68_v7  ;;  %p576_p5 = pnand %p575_p4, %p569_p1 }
  0x35   :  { %449 = vmatprep.subr.mxu0 %v601_v0 }
  0x36   :  { %450 = vmatpush3.msra.mxu0 %v67_v8 }
  0x37   :  { %451 = vmatprep.subr.mxu0 %v601_v0 }
  0x38   :  { %452 = vmatpush3.msra.mxu0 %v66_v9 }
  0x39   :  { %453 = vmatprep.subr.mxu0 %v601_v0 }
  0x3a   :  { %454 = vmatpush3.msra.mxu0 %v65_v10 }
  0x3b   :  { %455 = vmatprep.subr.mxu0 %v601_v0 }
  0x3c   :  { %456 = vmatpush3.msra.mxu0 %v64_v14 }
  0x3d   :  { %457 = vmatprep.subr.mxu0 %v601_v0 }
  0x3e   :  { %458 = vmatpush3.msra.mxu0 %v63_v15 }
  0x3f   :  { %459 = vmatprep.subr.mxu0 %v601_v0 }
  0x40   :  { %460 = vmatpush3.msra.mxu0 %v62_v20 }
  0x41   :  { %461 = vmatprep.subr.mxu0 %v601_v0 }
  0x42   :  { %462 = vmatpush3.msra.mxu0 %v61_v21 }
  0x43   :  { %463 = vmatprep.subr.mxu0 %v601_v0 }
  0x44   :  { %464 = vmatpush3.msra.mxu0 %v60_v24 }
  0x45   :  { %465 = vmatprep.subr.mxu0 %v601_v0 }
  0x46   :  { %466 = vmatpush3.msra.mxu0 %v59_v25 }
  0x47   :  { %468 = vmatmul.mubr.f32.vlgmr.msra.gmra.mxu0 %v84_v26 }
 0x107   :  { %v152_v37 = vpop.f32.mrf.mxu0 }
 0x108   :  { %v163_v38 = vrot.slane %v152_v37, %v83_v23 }
 0x109   :  { %v469_v40 = vpop.f32.mrf.mxu0 }
 0x10a   :  { %v164_v41 = vcombine.high %v163_v38, %v163_v38  ;;  %v201_v42 = vadd.f32 %v194_v36, %v163_v38 }
 0x10c   :  { %v202_v43 = vadd.f32 %v198_v39, %v164_v41  ;;  %484 = vtanh.f32 %v201_v42 }
 0x10e   :  { %486 = vtanh.f32 %v202_v43 }
 0x119   :  { %v485_v45 = vpop.eup %484 }
 0x11a   :  { %v212_v46 = vmul.f32 %v485_v45, %v417_v44 }
 0x11b   :  { %v487_v47 = vpop.eup %486 }
 0x11c   :  { %v229_v48 = vrot.slane %v212_v46, %v83_v23  ;;  %v213_v49 = vmul.f32 %v487_v47, %v417_v44  ;;  %v215_v51 = vsel %vm214_vm1, %v212_v46, 0.0 }
 0x11e   :  { %249 = vrot.lane.b32.xlu1 %v229_v48, %s605_s7  ;;  %237 = vrot.lane.b32.xlu0 %v229_v48, %s606_s8  ;;  %v236_v50 = vrot.slane %v213_v49, %v83_v23  ;;  %v218_v52 = vsel %vm214_vm1, %v213_v49, 0.0 }
 0x122   :  { %251 = vrot.lane.b32.xlu1 %v236_v50, %s605_s7  ;;  %239 = vrot.lane.b32.xlu0 %v236_v50, %s606_s8 }
 0x126   :  { %263 = vrot.lane.b32.xlu1 %v236_v50, %s595_s18  ;;  %261 = vrot.lane.b32.xlu0 %v229_v48, %s595_s18 }
 0x145   :  { %216 = vadd.xlane.f32.xlu0 %v215_v51 }
 0x14a   :  { %219 = vadd.xlane.f32.xlu1 %v218_v52 }
 0x190   :  { %v250_v53 = vpop.permute.xlu1 %249  ;;  %v238_v54 = vpop.permute.xlu0 %237 }
 0x191   :  { %v243_v55 = vsel %vm214_vm1, %v238_v54, 0.0  ;;  %v255_v56 = vsel %vm214_vm1, %v250_v53, 0.0 }
 0x192   :  { %244 = vadd.xlane.f32.xlu0 %v243_v55  ;;  %256 = vadd.xlane.f32.xlu1 %v255_v56 }
 0x194   :  { %v252_v57 = vpop.permute.xlu1 %251  ;;  %v240_v58 = vpop.permute.xlu0 %239 }
 0x195   :  { %v246_v59 = vsel %vm214_vm1, %v240_v58, 0.0  ;;  %v258_v61 = vsel %vm214_vm1, %v252_v57, 0.0 }
 0x196   :  { %247 = vadd.xlane.f32.xlu0 %v246_v59 }
 0x198   :  { %v262_v60 = vpop.permute.xlu0 %261  ;;  %v264_v63 = vpop.permute.xlu1 %263 }
 0x199   :  { %v267_v62 = vsel %vm214_vm1, %v262_v60, 0.0  ;;  %v270_v0 = vsel %vm214_vm1, %v264_v63, 0.0 }
 0x19a   :  { %259 = vadd.xlane.f32.xlu0 %v258_v61  ;;  %268 = vadd.xlane.f32.xlu1 %v267_v62 }
 0x19e   :  { %271 = vadd.xlane.f32.xlu0 %v270_v0 }
 0x1ce   :  { %v217_v1 = vpop.xlane.xlu0 %216 }
 0x1d3   :  { %v220_v2 = vpop.xlane.xlu1 %219 }
 0x21b   :  { %v245_v3 = vpop.xlane.xlu0 %244  ;;  %v257_v5 = vpop.xlane.xlu1 %256 }
 0x21c   :  { %v273_v4 = vmax.f32 %v217_v1, %v245_v3 }
 0x21e   :  { %v275_v7 = vmax.f32 %v273_v4, %v257_v5 }
 0x21f   :  { %v248_v6 = vpop.xlane.xlu0 %247 }
 0x220   :  { %v274_v10 = vmax.f32 %v220_v2, %v248_v6 }
 0x223   :  { %v260_v8 = vpop.xlane.xlu0 %259  ;;  %v269_v9 = vpop.xlane.xlu1 %268 }
 0x224   :  { %v277_v11 = vmax.f32 %v275_v7, %v269_v9  ;;  %v276_v12 = vmax.f32 %v274_v10, %v260_v8 }
 0x226   :  { %v280_v13 = vsel %vm279_vm2, %v277_v11, -inf }
 0x227   :  { %v281_v14 = vrot.slane %v280_v13, 4  ;;  %v272_v15 = vpop.xlane.xlu0 %271 }
 0x228   :  { %v278_v16 = vmax.f32 %v276_v12, %v272_v15 }
 0x229   :  { %v282_v17 = vmax.f32 %v280_v13, %v281_v14 }
 0x22a   :  { %v287_v20 = vsel %vm279_vm2, %v278_v16, -inf }
 0x22b   :  { %v283_v21 = vrot.slane %v282_v17, 2  ;;  %v288_v22 = vrot.slane %v287_v20, 4 }
 0x22d   :  { %v284_v23 = vmax.f32 %v282_v17, %v283_v21  ;;  %v289_v24 = vmax.f32 %v287_v20, %v288_v22 }
 0x22f   :  { %v285_v25 = vrot.slane %v284_v23, 1  ;;  %v290_v26 = vrot.slane %v289_v24, 2 }
 0x231   :  { %v286_v27 = vmax.f32 %v284_v23, %v285_v25  ;;  %v291_v28 = vmax.f32 %v289_v24, %v290_v26 }
 0x233   :  { %v294_v29 = vsub.f32 %v217_v1, %v286_v27  ;;  %v300_v30 = vsub.f32 %v245_v3, %v286_v27  ;;  %v306_v31 = vsub.f32 %v257_v5, %v286_v27  ;;  %v312_v32 = vsub.f32 %v269_v9, %v286_v27 }
 0x234   :  { %v292_v33 = vrot.slane %v291_v28, 1 }
 0x235   :  { %v296_v34 = vmul.f32 1.442695, %v294_v29  ;;  %v302_v35 = vmul.f32 1.442695, %v300_v30  ;;  %v308_v36 = vmul.f32 1.442695, %v306_v31 }
 0x236   :  { %v293_v37 = vmax.f32 %v291_v28, %v292_v33  ;;  %v314_v38 = vmul.f32 1.442695, %v312_v32 }
 0x237   :  { %488 = vpow2.f32 %v296_v34 }
 0x238   :  { %490 = vpow2.f32 %v302_v35  ;;  %v295_v39 = vsub.f32 %v220_v2, %v293_v37  ;;  %v301_v40 = vsub.f32 %v248_v6, %v293_v37  ;;  %v307_v41 = vsub.f32 %v260_v8, %v293_v37 }
 0x239   :  { %492 = vpow2.f32 %v308_v36  ;;  %v313_v44 = vsub.f32 %v272_v15, %v293_v37 }
 0x23a   :  { %v304_v42 = vmul.f32 1.442695, %v301_v40  ;;  %v310_v43 = vmul.f32 1.442695, %v307_v41  ;;  %494 = vpow2.f32 %v314_v38  ;;  %v298_v45 = vmul.f32 1.442695, %v295_v39 }
 0x23b   :  { %v316_v46 = vmul.f32 1.442695, %v313_v44 }
 0x23c   :  { %496 = vpow2.f32 %v304_v42 }
 0x23d   :  { %498 = vpow2.f32 %v310_v43 }
 0x23e   :  { %500 = vpow2.f32 %v298_v45 }
 0x23f   :  { %502 = vpow2.f32 %v316_v46 }
 0x244   :  { %v489_v47 = vpop.eup %488 }
 0x245   :  { %v491_v48 = vpop.eup %490  ;;  %v338_v15 = vmul.f32 %v489_v47, %v644_v18 }
 0x246   :  { %v318_v49 = vadd.f32 %v491_v48, %v489_v47  ;;  %v340_v50 = vmul.f32 %v491_v48, %v644_v18  ;;  %v493_v51 = vpop.eup %492 }
 0x247   :  { %v495_v52 = vpop.eup %494  ;;  %v352_v57 = vmul.f32 %v493_v51, %v644_v18 }
 0x248   :  { %v320_v53 = vadd.f32 %v493_v51, %v318_v49  ;;  %344 = vrot.lane.b32.xlu1 %v340_v50, %s606_s8  ;;  %v364_v62 = vmul.f32 %v495_v52, %v644_v18 }
 0x249   :  { %v497_v54 = vpop.eup %496 }
 0x24a   :  { %v322_v55 = vadd.f32 %v495_v52, %v320_v53  ;;  %v341_v56 = vmul.f32 %v497_v54, %v646_v19  ;;  %v499_v58 = vpop.eup %498 }
 0x24b   :  { %v501_v59 = vpop.eup %500  ;;  %v353_v63 = vmul.f32 %v499_v58, %v646_v19 }
 0x24c   :  { %v324_v60 = vsel %vm279_vm2, %v322_v55, 0.0  ;;  %346 = vrot.lane.b32.xlu0 %v341_v56, %s606_s8  ;;  %356 = vrot.lane.b32.xlu1 %v352_v57, %s605_s7  ;;  %v319_v61 = vadd.f32 %v501_v59, %v497_v54  ;;  %v503_v0 = vpop.eup %502  ;;  %v339_v23 = vmul.f32 %v501_v59, %v646_v19 }
 0x24d   :  { %v365_v3 = vmul.f32 %v503_v0, %v646_v19  ;;  %v325_v5 = vrot.slane %v324_v60, 4 }
 0x24e   :  { %v321_v1 = vadd.f32 %v499_v58, %v319_v61 }
 0x24f   :  { %v326_v6 = vadd.f32 %v325_v5, %v324_v60 }
 0x250   :  { %368 = vrot.lane.b32.xlu0 %v364_v62, %s595_s18  ;;  %358 = vrot.lane.b32.xlu1 %v353_v63, %s605_s7  ;;  %v323_v2 = vadd.f32 %v503_v0, %v321_v1 }
 0x251   :  { %v327_v8 = vrot.slane %v326_v6, 2 }
 0x252   :  { %v331_v4 = vsel %vm279_vm2, %v323_v2, 0.0 }
 0x253   :  { %v332_v7 = vrot.slane %v331_v4, 4  ;;  %v328_v10 = vadd.f32 %v327_v8, %v326_v6 }
 0x254   :  { %370 = vrot.lane.b32.xlu1 %v365_v3, %s595_s18 }
 0x255   :  { %v333_v9 = vadd.f32 %v332_v7, %v331_v4  ;;  %v329_v13 = vrot.slane %v328_v10, 1 }
 0x257   :  { %v334_v11 = vrot.slane %v333_v9, 2  ;;  %v330_v21 = vadd.f32 %v329_v13, %v328_v10 }
 0x259   :  { %v335_v14 = vadd.f32 %v334_v11, %v333_v9  ;;  %504 = vrcp.f32 %v330_v21 }
 0x25b   :  { %v336_v22 = vrot.slane %v335_v14, 1 }
 0x25d   :  { %v337_v29 = vadd.f32 %v336_v22, %v335_v14 }
 0x25f   :  { %506 = vrcp.f32 %v337_v29 }
 0x266   :  { %v505_v43 = vpop.eup %504 }
 0x26c   :  { %v507_v47 = vpop.eup %506 }
 0x2ba   :  { %v345_v12 = vpop.permute.xlu1 %344 }
 0x2bb   :  { %v350_v20 = vadd.f32 %v345_v12, %v338_v15 }
 0x2be   :  { %v347_v16 = vpop.permute.xlu0 %346  ;;  %v357_v17 = vpop.permute.xlu1 %356 }
 0x2bf   :  { %v362_v24 = vadd.f32 %v357_v17, %v350_v20  ;;  %v351_v27 = vadd.f32 %v347_v16, %v339_v23 }
 0x2c2   :  { %v369_v25 = vpop.permute.xlu0 %368  ;;  %v359_v26 = vpop.permute.xlu1 %358 }
 0x2c3   :  { %v374_v28 = vadd.f32 %v369_v25, %v362_v24  ;;  %v363_v31 = vadd.f32 %v359_v26, %v351_v27 }
 0x2c5   :  { %v376_v30 = vsel %vm214_vm1, %v374_v28, 0.0 }
 0x2c6   :  { %v377_v32 = vrot.slane %v376_v30, 4  ;;  %v371_v33 = vpop.permute.xlu1 %370 }
 0x2c7   :  { %v375_v18 = vadd.f32 %v371_v33, %v363_v31 }
 0x2c8   :  { %v378_v34 = vadd.f32 %v377_v32, %v376_v30 }
 0x2c9   :  { %v383_v35 = vsel %vm214_vm1, %v375_v18, 0.0 }
 0x2ca   :  { %v379_v36 = vrot.slane %v378_v34, 2  ;;  %v384_v37 = vrot.slane %v383_v35, 4 }
 0x2cc   :  { %v380_v19 = vadd.f32 %v379_v36, %v378_v34  ;;  %v385_v38 = vadd.f32 %v384_v37, %v383_v35 }
 0x2ce   :  { %v381_v39 = vrot.slane %v380_v19, 1  ;;  %v386_v40 = vrot.slane %v385_v38, 2 }
 0x2d0   :  { %v382_v41 = vadd.f32 %v381_v39, %v380_v19  ;;  %v387_v42 = vadd.f32 %v386_v40, %v385_v38 }
 0x2d2   :  { %v388_v44 = vrot.slane %v387_v42, 1  ;;  %v392_v45 = vmul.f32 %v505_v43, %v382_v41 }
 0x2d4   :  { %v389_v46 = vadd.f32 %v388_v44, %v387_v42 }
 0x2d6   :  { %v393_v48 = vmul.f32 %v507_v47, %v389_v46 }
 0x2d8   :  { %v397_v49 = vsel %vm396_vm3, %v393_v48, %v392_v45 }
 0x2d9   :  { %399 = vst.msk [vmem:[#allocation8] sm:$0x3] %vm214_vm1, %v397_v49 }
 0x2da   :  { %579 = shalt.err (!%p576_p5)
}
 0x2db   :  { %409 = dma.vmem_to_hbm [thread:$0]  %s407_s9, 32, %s695_s4, [#allocation4]  }
 0x2dc   :  { %592 = dma.done.wait [#allocation4], 32  }
 0x2dd   :  { %593 = vsyncadd [#allocation4], 4294967264 }
 0x2de   :  { %413 = vsyncpa [#allocation3], 1 }
 0x2df   :  { %414 = vsyncpa [#allocation6], 1 }
 0x2e0   :  { %415 = vsyncpa [#allocation4], 1 }

</bundles_post_ra>
